<compile_context>
chip_gen: v5e
topology: v5e:2x2
jax: 0.10.0
libtpu: 0.0.40
codegen_flags: <defaults>
</compile_context>

<pallas_src>
import functools
import math
from typing import Sequence

import jax
import jax.numpy as jnp
import numpy as np
from jax.experimental import pallas as pl
from jax.experimental.pallas import tpu as pltpu

EPS = 1e-5          # torch.nn.LayerNorm default eps
LANE = 128
SUBLANE = 8


def _round_up(n: int, m: int) -> int:
    return ((n + m - 1) // m) * m


# ---------------------------------------------------------------------------
# Kernel
# ---------------------------------------------------------------------------
def _make_mlp_kernel(inner_dims: Sequence[int], out_pad: int):
    """Fused (LN -> Linear -> ReLU)* -> Linear on one (tb, d_in) batch tile.

    Kernel args: x_ref, slab_ref, w_0 ... w_L, out_ref.
      slab_ref : (rows_pad, slab_w) f32 -- row 3i = ln_w_i, 3i+1 = ln_b_i,
                 3i+2 = bias_i, row 3*num_hidden = final bias (lane-padded).
      w_i      : (d_in_i, d_out_i) bf16; final weight lane-padded to out_pad.
    """
    num_hidden = len(inner_dims) - 2

    def kernel(x_ref, slab_ref, *rest):
        out_ref = rest[-1]
        w_refs = rest[:-1]
        slab = slab_ref[...]                          # tiny, stays in vregs
        h = x_ref[...].astype(jnp.float32)

        for i in range(num_hidden):
            d_in = inner_dims[i]
            d_out = inner_dims[i + 1]
            ln_w = slab[3 * i:3 * i + 1, :d_in]       # (1, d_in)
            ln_b = slab[3 * i + 1:3 * i + 2, :d_in]   # (1, d_in)
            bias = slab[3 * i + 2:3 * i + 3, :d_out]  # (1, d_out)

            # LayerNorm over the feature dim (two-pass variance, torch-style biased).
            mean = jnp.mean(h, axis=-1, keepdims=True)
            c = h - mean
            var = jnp.mean(c * c, axis=-1, keepdims=True)
            h = c * jax.lax.rsqrt(var + EPS) * ln_w + ln_b

            # Linear on the MXU (bf16 operands, f32 accumulation) + bias.
            h = jnp.dot(h.astype(jnp.bfloat16), w_refs[i][...],
                        preferred_element_type=jnp.float32) + bias

            # Dropout(p=0.0) is the identity; ReLU.
            h = jnp.maximum(h, 0.0)

        # Final Linear (output dim pre-padded to a lane multiple -> unmasked stores).
        b_f = slab[3 * num_hidden:3 * num_hidden + 1, :out_pad]
        out_ref[...] = (jnp.dot(h.astype(jnp.bfloat16), w_refs[num_hidden][...],
                                preferred_element_type=jnp.float32)
                        + b_f).astype(out_ref.dtype)

    return kernel


# ---------------------------------------------------------------------------
# Parameters
# ---------------------------------------------------------------------------
def init_mlp_params(key, inner_dims: Sequence[int]):
    """torch-default init: LayerNorm weight=1/bias=0; Linear U(-1/sqrt(in), 1/sqrt(in)).
    Linear weights are returned pre-transposed to (in, out), all f32."""
    params = []
    num_hidden = len(inner_dims) - 2
    for i in range(num_hidden):
        d_in, d_out = inner_dims[i], inner_dims[i + 1]
        key, kw, kb = jax.random.split(key, 3)
        bound = 1.0 / np.sqrt(d_in)
        params += [
            jnp.ones((1, d_in), jnp.float32),                                   # ln_w
            jnp.zeros((1, d_in), jnp.float32),                                  # ln_b
            jax.random.uniform(kw, (d_in, d_out), jnp.float32, -bound, bound),  # W^T
            jax.random.uniform(kb, (1, d_out), jnp.float32, -bound, bound),     # b
        ]
    d_in, d_out = inner_dims[-2], inner_dims[-1]
    key, kw, kb = jax.random.split(key, 3)
    bound = 1.0 / np.sqrt(d_in)
    params += [
        jax.random.uniform(kw, (d_in, d_out), jnp.float32, -bound, bound),
        jax.random.uniform(kb, (1, d_out), jnp.float32, -bound, bound),
    ]
    return params


def prepare_mlp_params(params, inner_dims: Sequence[int]):
    """One-time (outside jit) preprocessing for the kernel:
       * matmul weights cast to bf16, final weight lane-padded on its output dim,
       * all (1, d) LN params / biases packed into a single f32 slab operand."""
    inner_dims = tuple(int(d) for d in inner_dims)
    num_hidden = len(inner_dims) - 2
    out_dim = inner_dims[-1]
    out_pad = _round_up(out_dim, LANE)
    slab_w = _round_up(max(max(inner_dims[:-1]), out_pad), LANE)
    rows = 3 * num_hidden + 1
    rows_pad = _round_up(rows, SUBLANE)

    slab = np.zeros((rows_pad, slab_w), np.float32)
    weights = []
    idx = 0
    for i in range(num_hidden):
        ln_w, ln_b, w, b = params[idx:idx + 4]
        idx += 4
        d_in, d_out = inner_dims[i], inner_dims[i + 1]
        slab[3 * i, :d_in] = np.asarray(ln_w, np.float32).reshape(-1)
        slab[3 * i + 1, :d_in] = np.asarray(ln_b, np.float32).reshape(-1)
        slab[3 * i + 2, :d_out] = np.asarray(b, np.float32).reshape(-1)
        weights.append(jnp.asarray(np.asarray(w, np.float32), jnp.bfloat16))
    w_f, b_f = params[idx], params[idx + 1]
    wf = np.zeros((inner_dims[-2], out_pad), np.float32)
    wf[:, :out_dim] = np.asarray(w_f, np.float32)
    weights.append(jnp.asarray(wf, jnp.bfloat16))
    slab[3 * num_hidden, :out_dim] = np.asarray(b_f, np.float32).reshape(-1)

    slab = jnp.asarray(slab)
    param_bytes = int(sum(int(math.prod(w.shape)) * 2 for w in weights)
                      + int(math.prod(slab.shape)) * 4)
    return {"inner_dims": inner_dims, "out_pad": out_pad, "slab": slab,
            "weights": tuple(weights), "param_bytes": param_bytes}


# ---------------------------------------------------------------------------
# Tile / VMEM budget selection
# ---------------------------------------------------------------------------
def _vmem_budget_bytes() -> int:
    """Per-core VMEM budget: device capacity minus ~20% headroom for compiler scratch and
    double buffers (128 MiB on v5e/v6e, 64 MiB on v7x); conservative fallback if unknown."""
    try:
        cap = int(pltpu.get_tpu_info().vmem_capacity_bytes)
    except Exception:
        cap = 64 * 1024 * 1024   # assume the smallest (v7x-sized) VMEM
    return int(cap * 0.8)


def _choose_tile(batch: int, inner_dims, out_pad: int, param_bytes: int,
                 max_tile: int = 2048):
    budget = _vmem_budget_bytes()
    d_in = inner_dims[0]
    max_d = max(max(inner_dims[:-1]), out_pad)
    # Per-row VMEM: double-buffered f32 x/out tiles + headroom for live activations.
    per_row = 4 * (2 * d_in + 2 * out_pad + 6 * max_d)
    tb = max(SUBLANE, (budget - param_bytes) // per_row)
    tb = min(tb, max_tile)

    rb = _round_up(batch, SUBLANE)
    tb = min(tb, rb)
    # Guarantee >=2 grid steps when the batch allows it (keeps both v7x TCs busy).
    if rb >= 2 * SUBLANE:
        tb = min(tb, (rb // 2) // SUBLANE * SUBLANE)
    tb = max(SUBLANE, (tb // SUBLANE) * SUBLANE)     # always a multiple of 8
    return int(tb), int(budget)


# ---------------------------------------------------------------------------
# Forward
# ---------------------------------------------------------------------------
def _resident_spec(shape, single_buffered: bool) -> pl.BlockSpec:
    """Constant-index (VMEM-resident across grid steps) operand; single-buffered when possible."""
    if single_buffered:
        return pl.BlockSpec(shape, lambda i: (0, 0), pipeline_mode=pl.Buffered(1))
    return pl.BlockSpec(shape, lambda i: (0, 0))


@functools.partial(
    jax.jit,
    static_argnames=("inner_dims", "out_pad", "tb", "vmem_limit", "single_buffer_params"))
def _mlp_pallas(x, slab, weights, *, inner_dims, out_pad, tb, vmem_limit,
                single_buffer_params):
    num_hidden = len(inner_dims) - 2
    batch, d_in = x.shape
    out_dim = inner_dims[-1]

    padded_batch = _round_up(batch, tb)
    if padded_batch != batch:
        x = jnp.pad(x, ((0, padded_batch - batch), (0, 0)))
    grid = (padded_batch // tb,)

    in_specs = [pl.BlockSpec((tb, d_in), lambda i: (i, 0)),
                _resident_spec(slab.shape, single_buffer_params)]
    for w in weights:
        in_specs.append(_resident_spec(w.shape, single_buffer_params))
    out_specs = pl.BlockSpec((tb, out_pad), lambda i: (i, 0))

    dims = list(inner_dims[:-1]) + [out_pad]
    flops = 2 * padded_batch * sum(dims[i] * dims[i + 1] for i in range(len(dims) - 1))
    param_bytes = (sum(int(math.prod(w.shape)) * 2 for w in weights)
                   + int(math.prod(slab.shape)) * 4)
    bytes_accessed = padded_batch * d_in * 4 + param_bytes + padded_batch * out_pad * 4
    cost = pl.CostEstimate(flops=int(flops),
                           transcendentals=int(num_hidden * padded_batch),
                           bytes_accessed=int(bytes_accessed))

    out = pl.pallas_call(
        _make_mlp_kernel(inner_dims, out_pad),
        out_shape=jax.ShapeDtypeStruct((padded_batch, out_pad), x.dtype),
        grid=grid,
        in_specs=in_specs,
        out_specs=out_specs,
        compiler_params=pltpu.CompilerParams(
            dimension_semantics=("parallel",),    # megacore sharding of batch on v7x
            vmem_limit_bytes=int(vmem_limit)),
        cost_estimate=cost,
    )(x, slab, *weights)

    return out[:batch, :out_dim]


def mlp_forward(x, prepared):
    inner_dims = prepared["inner_dims"]
    out_pad = prepared["out_pad"]
    tb, vmem_limit = _choose_tile(x.shape[0], inner_dims, out_pad,
                                  prepared["param_bytes"])
    kwargs = dict(inner_dims=inner_dims, out_pad=out_pad, tb=tb, vmem_limit=vmem_limit)
    try:
        return _mlp_pallas(x, prepared["slab"], prepared["weights"],
                           single_buffer_params=True, **kwargs)
    except Exception:
        # Fallback for jax builds where BlockSpec(pipeline_mode=pl.Buffered(1)) is
        # unavailable; resident params then simply use the default double buffer.
        return _mlp_pallas(x, prepared["slab"], prepared["weights"],
                           single_buffer_params=False, **kwargs)


def mlp_forward_ref(x, params, inner_dims):
    """Pure-JAX f32 reference replicating the torch forward (eval mode)."""
    num_hidden = len(inner_dims) - 2
    h = x.astype(jnp.float32)
    idx = 0
    for _ in range(num_hidden):
        ln_w, ln_b, w, b = params[idx:idx + 4]
        idx += 4
        mean = jnp.mean(h, axis=-1, keepdims=True)
        var = jnp.mean((h - mean) ** 2, axis=-1, keepdims=True)
        h = (h - mean) / jnp.sqrt(var + EPS) * ln_w + ln_b
        h = jnp.maximum(h @ w + b, 0.0)
    return h @ params[idx] + params[idx + 1]


if __name__ == "__main__":
    # MultiLayerPerceptron(inner_dims=[32, 64, 32, 16], dropout=0.0, activation='relu')
    inner_dims = (32, 64, 32, 16)
    batch = 64   # >= 16 rows -> the kernel runs with >=2 grid steps (megacore path)

    key = jax.random.PRNGKey(0)
    kx, kp = jax.random.split(key)
    x = jax.random.normal(kx, (batch, inner_dims[0]), jnp.float32)
    params = init_mlp_params(kp, inner_dims)
    prepared = prepare_mlp_params(params, inner_dims)   # one-time: bf16 cast / pad / pack

    out = jax.block_until_ready(mlp_forward(x, prepared))

    # bf16 MXU matmuls (f32 accumulation) vs an all-f32 reference -> loosened tolerance.
    ref = mlp_forward_ref(x, params, inner_dims)
    np.testing.assert_allclose(np.asarray(out), np.asarray(ref), rtol=5e-2, atol=5e-2)

    print("KERNEL_OK")
</pallas_src>

<mosaic_0001>
module attributes {stable_mosaic.version = 11 : i64} {
  func.func @kernel(%arg0: i32, %arg1: memref<32x32xf32, #tpu.memory_space<vmem>>, %arg2: memref<8x128xf32, #tpu.memory_space<vmem>>, %arg3: memref<32x64xbf16, #tpu.memory_space<vmem>>, %arg4: memref<64x32xbf16, #tpu.memory_space<vmem>>, %arg5: memref<32x128xbf16, #tpu.memory_space<vmem>>, %arg6: memref<32x128xf32, #tpu.memory_space<vmem>>) attributes {dimension_semantics = [#tpu.dimension_semantics<parallel>], iteration_bounds = array<i64: 2>, scalar_prefetch = 0 : i64, scratch_operands = 0 : i64, tpu.core_type = #tpu.core_type<tc>, window_params = [{transform_indices = @transform_0, window_bounds = array<i64: 32, 32>}, {pipeline_mode = #tpu.pipeline_mode<synchronous>, transform_indices = @transform_1, window_bounds = array<i64: 8, 128>}, {pipeline_mode = #tpu.pipeline_mode<synchronous>, transform_indices = @transform_2, window_bounds = array<i64: 32, 64>}, {pipeline_mode = #tpu.pipeline_mode<synchronous>, transform_indices = @transform_3, window_bounds = array<i64: 64, 32>}, {pipeline_mode = #tpu.pipeline_mode<synchronous>, transform_indices = @transform_4, window_bounds = array<i64: 32, 128>}, {transform_indices = @transform_5, window_bounds = array<i64: 32, 128>}]} {
    %c0 = arith.constant 0 : index
    %c0_0 = arith.constant 0 : index
    %0 = vector.load %arg2[%c0, %c0_0] : memref<8x128xf32, #tpu.memory_space<vmem>>, vector<8x128xf32>
    %c0_1 = arith.constant 0 : index
    %c0_2 = arith.constant 0 : index
    %1 = vector.load %arg1[%c0_1, %c0_2] : memref<32x32xf32, #tpu.memory_space<vmem>>, vector<32x32xf32>
    %2 = vector.extract_strided_slice %0 {offsets = [0, 0], sizes = [1, 32], strides = [1, 1]} : vector<8x128xf32> to vector<1x32xf32>
    %3 = vector.extract_strided_slice %0 {offsets = [1, 0], sizes = [1, 32], strides = [1, 1]} : vector<8x128xf32> to vector<1x32xf32>
    %4 = vector.extract_strided_slice %0 {offsets = [2, 0], sizes = [1, 64], strides = [1, 1]} : vector<8x128xf32> to vector<1x64xf32>
    %cst = arith.constant dense<0.000000e+00> : vector<32xf32>
    %5 = vector.multi_reduction <add>, %1, %cst [1] : vector<32x32xf32> to vector<32xf32>
    %6 = vector.shape_cast %5 : vector<32xf32> to vector<32x1xf32>
    %cst_3 = arith.constant 3.200000e+01 : f32
    %7 = vector.broadcast %cst_3 : f32 to vector<32x1xf32>
    %8 = arith.divf %6, %7 : vector<32x1xf32>
    %9 = vector.broadcast %8 : vector<32x1xf32> to vector<32x32xf32>
    %10 = arith.subf %1, %9 : vector<32x32xf32>
    %11 = arith.mulf %10, %10 : vector<32x32xf32>
    %cst_4 = arith.constant dense<0.000000e+00> : vector<32xf32>
    %12 = vector.multi_reduction <add>, %11, %cst_4 [1] : vector<32x32xf32> to vector<32xf32>
    %13 = vector.shape_cast %12 : vector<32xf32> to vector<32x1xf32>
    %cst_5 = arith.constant 3.200000e+01 : f32
    %14 = vector.broadcast %cst_5 : f32 to vector<32x1xf32>
    %15 = arith.divf %13, %14 : vector<32x1xf32>
    %cst_6 = arith.constant 9.99999974E-6 : f32
    %16 = vector.broadcast %cst_6 : f32 to vector<32x1xf32>
    %17 = arith.addf %15, %16 : vector<32x1xf32>
    %18 = math.rsqrt %17 : vector<32x1xf32>
    %19 = vector.broadcast %18 : vector<32x1xf32> to vector<32x32xf32>
    %20 = arith.mulf %10, %19 : vector<32x32xf32>
    %21 = vector.broadcast %2 : vector<1x32xf32> to vector<32x32xf32>
    %22 = arith.mulf %20, %21 : vector<32x32xf32>
    %23 = vector.broadcast %3 : vector<1x32xf32> to vector<32x32xf32>
    %24 = arith.addf %22, %23 : vector<32x32xf32>
    %25 = arith.truncf %24 : vector<32x32xf32> to vector<32x32xbf16>
    %c0_7 = arith.constant 0 : index
    %c0_8 = arith.constant 0 : index
    %26 = vector.load %arg3[%c0_7, %c0_8] : memref<32x64xbf16, #tpu.memory_space<vmem>>, vector<32x64xbf16>
    %cst_9 = arith.constant dense<0.000000e+00> : vector<32x64xf32>
    %27 = tpu.matmul %25, %26, %cst_9 {dimension_numbers = #tpu.dot_dimension_numbers<[1], [0], [0], [1], [0, 0, 1, 1], [], []>} : vector<32x32xbf16>, vector<32x64xbf16>, vector<32x64xf32> -> vector<32x64xf32>
    %28 = vector.broadcast %4 : vector<1x64xf32> to vector<32x64xf32>
    %29 = arith.addf %27, %28 : vector<32x64xf32>
    %cst_10 = arith.constant 0.000000e+00 : f32
    %30 = vector.broadcast %cst_10 : f32 to vector<32x64xf32>
    %31 = arith.maximumf %29, %30 : vector<32x64xf32>
    %32 = vector.extract_strided_slice %0 {offsets = [3, 0], sizes = [1, 64], strides = [1, 1]} : vector<8x128xf32> to vector<1x64xf32>
    %33 = vector.extract_strided_slice %0 {offsets = [4, 0], sizes = [1, 64], strides = [1, 1]} : vector<8x128xf32> to vector<1x64xf32>
    %34 = vector.extract_strided_slice %0 {offsets = [5, 0], sizes = [1, 32], strides = [1, 1]} : vector<8x128xf32> to vector<1x32xf32>
    %cst_11 = arith.constant dense<0.000000e+00> : vector<32xf32>
    %35 = vector.multi_reduction <add>, %31, %cst_11 [1] : vector<32x64xf32> to vector<32xf32>
    %36 = vector.shape_cast %35 : vector<32xf32> to vector<32x1xf32>
    %cst_12 = arith.constant 6.400000e+01 : f32
    %37 = vector.broadcast %cst_12 : f32 to vector<32x1xf32>
    %38 = arith.divf %36, %37 : vector<32x1xf32>
    %39 = vector.broadcast %38 : vector<32x1xf32> to vector<32x64xf32>
    %40 = arith.subf %31, %39 : vector<32x64xf32>
    %41 = arith.mulf %40, %40 : vector<32x64xf32>
    %cst_13 = arith.constant dense<0.000000e+00> : vector<32xf32>
    %42 = vector.multi_reduction <add>, %41, %cst_13 [1] : vector<32x64xf32> to vector<32xf32>
    %43 = vector.shape_cast %42 : vector<32xf32> to vector<32x1xf32>
    %cst_14 = arith.constant 6.400000e+01 : f32
    %44 = vector.broadcast %cst_14 : f32 to vector<32x1xf32>
    %45 = arith.divf %43, %44 : vector<32x1xf32>
    %cst_15 = arith.constant 9.99999974E-6 : f32
    %46 = vector.broadcast %cst_15 : f32 to vector<32x1xf32>
    %47 = arith.addf %45, %46 : vector<32x1xf32>
    %48 = math.rsqrt %47 : vector<32x1xf32>
    %49 = vector.broadcast %48 : vector<32x1xf32> to vector<32x64xf32>
    %50 = arith.mulf %40, %49 : vector<32x64xf32>
    %51 = vector.broadcast %32 : vector<1x64xf32> to vector<32x64xf32>
    %52 = arith.mulf %50, %51 : vector<32x64xf32>
    %53 = vector.broadcast %33 : vector<1x64xf32> to vector<32x64xf32>
    %54 = arith.addf %52, %53 : vector<32x64xf32>
    %55 = arith.truncf %54 : vector<32x64xf32> to vector<32x64xbf16>
    %c0_16 = arith.constant 0 : index
    %c0_17 = arith.constant 0 : index
    %56 = vector.load %arg4[%c0_16, %c0_17] : memref<64x32xbf16, #tpu.memory_space<vmem>>, vector<64x32xbf16>
    %cst_18 = arith.constant dense<0.000000e+00> : vector<32x32xf32>
    %57 = tpu.matmul %55, %56, %cst_18 {dimension_numbers = #tpu.dot_dimension_numbers<[1], [0], [0], [1], [0, 0, 1, 1], [], []>} : vector<32x64xbf16>, vector<64x32xbf16>, vector<32x32xf32> -> vector<32x32xf32>
    %58 = vector.broadcast %34 : vector<1x32xf32> to vector<32x32xf32>
    %59 = arith.addf %57, %58 : vector<32x32xf32>
    %cst_19 = arith.constant 0.000000e+00 : f32
    %60 = vector.broadcast %cst_19 : f32 to vector<32x32xf32>
    %61 = arith.maximumf %59, %60 : vector<32x32xf32>
    %62 = vector.extract_strided_slice %0 {offsets = [6, 0], sizes = [1, 128], strides = [1, 1]} : vector<8x128xf32> to vector<1x128xf32>
    %63 = arith.truncf %61 : vector<32x32xf32> to vector<32x32xbf16>
    %c0_20 = arith.constant 0 : index
    %c0_21 = arith.constant 0 : index
    %64 = vector.load %arg5[%c0_20, %c0_21] : memref<32x128xbf16, #tpu.memory_space<vmem>>, vector<32x128xbf16>
    %cst_22 = arith.constant dense<0.000000e+00> : vector<32x128xf32>
    %65 = tpu.matmul %63, %64, %cst_22 {dimension_numbers = #tpu.dot_dimension_numbers<[1], [0], [0], [1], [0, 0, 1, 1], [], []>} : vector<32x32xbf16>, vector<32x128xbf16>, vector<32x128xf32> -> vector<32x128xf32>
    %66 = vector.broadcast %62 : vector<1x128xf32> to vector<32x128xf32>
    %67 = arith.addf %65, %66 : vector<32x128xf32>
    %c0_23 = arith.constant 0 : index
    %c0_24 = arith.constant 0 : index
    %68 = vector.load %arg6[%c0_23, %c0_24] : memref<32x128xf32, #tpu.memory_space<vmem>>, vector<32x128xf32>
    tpu.vector_store %arg6[%c0_23, %c0_24], %67 {strides = array<i32>} : memref<32x128xf32, #tpu.memory_space<vmem>>, vector<32x128xf32>,
    return
  }
  func.func @transform_0(%arg0: i32) -> (i32, i32) {
    %c0_i32 = arith.constant 0 : i32
    %c0_i32_0 = arith.constant 0 : i32
    return %arg0, %c0_i32 : i32, i32
  }
  func.func @transform_1(%arg0: i32) -> (i32, i32) {
    %c0_i32 = arith.constant 0 : i32
    %c0_i32_0 = arith.constant 0 : i32
    %c0_i32_1 = arith.constant 0 : i32
    return %c0_i32, %c0_i32_0 : i32, i32
  }
  func.func @transform_2(%arg0: i32) -> (i32, i32) {
    %c0_i32 = arith.constant 0 : i32
    %c0_i32_0 = arith.constant 0 : i32
    %c0_i32_1 = arith.constant 0 : i32
    return %c0_i32, %c0_i32_0 : i32, i32
  }
  func.func @transform_3(%arg0: i32) -> (i32, i32) {
    %c0_i32 = arith.constant 0 : i32
    %c0_i32_0 = arith.constant 0 : i32
    %c0_i32_1 = arith.constant 0 : i32
    return %c0_i32, %c0_i32_0 : i32, i32
  }
  func.func @transform_4(%arg0: i32) -> (i32, i32) {
    %c0_i32 = arith.constant 0 : i32
    %c0_i32_0 = arith.constant 0 : i32
    %c0_i32_1 = arith.constant 0 : i32
    return %c0_i32, %c0_i32_0 : i32, i32
  }
  func.func @transform_5(%arg0: i32) -> (i32, i32) {
    %c0_i32 = arith.constant 0 : i32
    %c0_i32_0 = arith.constant 0 : i32
    return %arg0, %c0_i32 : i32, i32
  }
}

module attributes {stable_mosaic.version = 11 : i64} {
  func.func @kernel(%arg0: i32, %arg1: memref<32x32xf32, #tpu.memory_space<vmem>>, %arg2: memref<8x128xf32, #tpu.memory_space<vmem>>, %arg3: memref<32x64xbf16, #tpu.memory_space<vmem>>, %arg4: memref<64x32xbf16, #tpu.memory_space<vmem>>, %arg5: memref<32x128xbf16, #tpu.memory_space<vmem>>, %arg6: memref<32x128xf32, #tpu.memory_space<vmem>>) attributes {dimension_semantics = [#tpu.dimension_semantics<parallel>], iteration_bounds = array<i64: 2>, scalar_prefetch = 0 : i64, scratch_operands = 0 : i64, tpu.core_type = #tpu.core_type<tc>, window_params = [{transform_indices = @transform_0, window_bounds = array<i64: 32, 32>}, {pipeline_mode = #tpu.pipeline_mode<synchronous>, transform_indices = @transform_1, window_bounds = array<i64: 8, 128>}, {pipeline_mode = #tpu.pipeline_mode<synchronous>, transform_indices = @transform_2, window_bounds = array<i64: 32, 64>}, {pipeline_mode = #tpu.pipeline_mode<synchronous>, transform_indices = @transform_3, window_bounds = array<i64: 64, 32>}, {pipeline_mode = #tpu.pipeline_mode<synchronous>, transform_indices = @transform_4, window_bounds = array<i64: 32, 128>}, {transform_indices = @transform_5, window_bounds = array<i64: 32, 128>}]} {
    %c0 = arith.constant 0 : index
    %c0_0 = arith.constant 0 : index
    %0 = vector.load %arg2[%c0, %c0_0] : memref<8x128xf32, #tpu.memory_space<vmem>>, vector<8x128xf32>
    %c0_1 = arith.constant 0 : index
    %c0_2 = arith.constant 0 : index
    %1 = vector.load %arg1[%c0_1, %c0_2] : memref<32x32xf32, #tpu.memory_space<vmem>>, vector<32x32xf32>
    %2 = vector.extract_strided_slice %0 {offsets = [0, 0], sizes = [1, 32], strides = [1, 1]} : vector<8x128xf32> to vector<1x32xf32>
    %3 = vector.extract_strided_slice %0 {offsets = [1, 0], sizes = [1, 32], strides = [1, 1]} : vector<8x128xf32> to vector<1x32xf32>
    %4 = vector.extract_strided_slice %0 {offsets = [2, 0], sizes = [1, 64], strides = [1, 1]} : vector<8x128xf32> to vector<1x64xf32>
    %cst = arith.constant dense<0.000000e+00> : vector<32xf32>
    %5 = vector.multi_reduction <add>, %1, %cst [1] : vector<32x32xf32> to vector<32xf32>
    %6 = vector.shape_cast %5 : vector<32xf32> to vector<32x1xf32>
    %cst_3 = arith.constant 3.200000e+01 : f32
    %7 = vector.broadcast %cst_3 : f32 to vector<32x1xf32>
    %8 = arith.divf %6, %7 : vector<32x1xf32>
    %9 = vector.broadcast %8 : vector<32x1xf32> to vector<32x32xf32>
    %10 = arith.subf %1, %9 : vector<32x32xf32>
    %11 = arith.mulf %10, %10 : vector<32x32xf32>
    %cst_4 = arith.constant dense<0.000000e+00> : vector<32xf32>
    %12 = vector.multi_reduction <add>, %11, %cst_4 [1] : vector<32x32xf32> to vector<32xf32>
    %13 = vector.shape_cast %12 : vector<32xf32> to vector<32x1xf32>
    %cst_5 = arith.constant 3.200000e+01 : f32
    %14 = vector.broadcast %cst_5 : f32 to vector<32x1xf32>
    %15 = arith.divf %13, %14 : vector<32x1xf32>
    %cst_6 = arith.constant 9.99999974E-6 : f32
    %16 = vector.broadcast %cst_6 : f32 to vector<32x1xf32>
    %17 = arith.addf %15, %16 : vector<32x1xf32>
    %18 = math.rsqrt %17 : vector<32x1xf32>
    %19 = vector.broadcast %18 : vector<32x1xf32> to vector<32x32xf32>
    %20 = arith.mulf %10, %19 : vector<32x32xf32>
    %21 = vector.broadcast %2 : vector<1x32xf32> to vector<32x32xf32>
    %22 = arith.mulf %20, %21 : vector<32x32xf32>
    %23 = vector.broadcast %3 : vector<1x32xf32> to vector<32x32xf32>
    %24 = arith.addf %22, %23 : vector<32x32xf32>
    %25 = arith.truncf %24 : vector<32x32xf32> to vector<32x32xbf16>
    %c0_7 = arith.constant 0 : index
    %c0_8 = arith.constant 0 : index
    %26 = vector.load %arg3[%c0_7, %c0_8] : memref<32x64xbf16, #tpu.memory_space<vmem>>, vector<32x64xbf16>
    %cst_9 = arith.constant dense<0.000000e+00> : vector<32x64xf32>
    %27 = tpu.matmul %25, %26, %cst_9 {dimension_numbers = #tpu.dot_dimension_numbers<[1], [0], [0], [1], [0, 0, 1, 1], [], []>} : vector<32x32xbf16>, vector<32x64xbf16>, vector<32x64xf32> -> vector<32x64xf32>
    %28 = vector.broadcast %4 : vector<1x64xf32> to vector<32x64xf32>
    %29 = arith.addf %27, %28 : vector<32x64xf32>
    %cst_10 = arith.constant 0.000000e+00 : f32
    %30 = vector.broadcast %cst_10 : f32 to vector<32x64xf32>
    %31 = arith.maximumf %29, %30 : vector<32x64xf32>
    %32 = vector.extract_strided_slice %0 {offsets = [3, 0], sizes = [1, 64], strides = [1, 1]} : vector<8x128xf32> to vector<1x64xf32>
    %33 = vector.extract_strided_slice %0 {offsets = [4, 0], sizes = [1, 64], strides = [1, 1]} : vector<8x128xf32> to vector<1x64xf32>
    %34 = vector.extract_strided_slice %0 {offsets = [5, 0], sizes = [1, 32], strides = [1, 1]} : vector<8x128xf32> to vector<1x32xf32>
    %cst_11 = arith.constant dense<0.000000e+00> : vector<32xf32>
    %35 = vector.multi_reduction <add>, %31, %cst_11 [1] : vector<32x64xf32> to vector<32xf32>
    %36 = vector.shape_cast %35 : vector<32xf32> to vector<32x1xf32>
    %cst_12 = arith.constant 6.400000e+01 : f32
    %37 = vector.broadcast %cst_12 : f32 to vector<32x1xf32>
    %38 = arith.divf %36, %37 : vector<32x1xf32>
    %39 = vector.broadcast %38 : vector<32x1xf32> to vector<32x64xf32>
    %40 = arith.subf %31, %39 : vector<32x64xf32>
    %41 = arith.mulf %40, %40 : vector<32x64xf32>
    %cst_13 = arith.constant dense<0.000000e+00> : vector<32xf32>
    %42 = vector.multi_reduction <add>, %41, %cst_13 [1] : vector<32x64xf32> to vector<32xf32>
    %43 = vector.shape_cast %42 : vector<32xf32> to vector<32x1xf32>
    %cst_14 = arith.constant 6.400000e+01 : f32
    %44 = vector.broadcast %cst_14 : f32 to vector<32x1xf32>
    %45 = arith.divf %43, %44 : vector<32x1xf32>
    %cst_15 = arith.constant 9.99999974E-6 : f32
    %46 = vector.broadcast %cst_15 : f32 to vector<32x1xf32>
    %47 = arith.addf %45, %46 : vector<32x1xf32>
    %48 = math.rsqrt %47 : vector<32x1xf32>
    %49 = vector.broadcast %48 : vector<32x1xf32> to vector<32x64xf32>
    %50 = arith.mulf %40, %49 : vector<32x64xf32>
    %51 = vector.broadcast %32 : vector<1x64xf32> to vector<32x64xf32>
    %52 = arith.mulf %50, %51 : vector<32x64xf32>
    %53 = vector.broadcast %33 : vector<1x64xf32> to vector<32x64xf32>
    %54 = arith.addf %52, %53 : vector<32x64xf32>
    %55 = arith.truncf %54 : vector<32x64xf32> to vector<32x64xbf16>
    %c0_16 = arith.constant 0 : index
    %c0_17 = arith.constant 0 : index
    %56 = vector.load %arg4[%c0_16, %c0_17] : memref<64x32xbf16, #tpu.memory_space<vmem>>, vector<64x32xbf16>
    %cst_18 = arith.constant dense<0.000000e+00> : vector<32x32xf32>
    %57 = tpu.matmul %55, %56, %cst_18 {dimension_numbers = #tpu.dot_dimension_numbers<[1], [0], [0], [1], [0, 0, 1, 1], [], []>} : vector<32x64xbf16>, vector<64x32xbf16>, vector<32x32xf32> -> vector<32x32xf32>
    %58 = vector.broadcast %34 : vector<1x32xf32> to vector<32x32xf32>
    %59 = arith.addf %57, %58 : vector<32x32xf32>
    %cst_19 = arith.constant 0.000000e+00 : f32
    %60 = vector.broadcast %cst_19 : f32 to vector<32x32xf32>
    %61 = arith.maximumf %59, %60 : vector<32x32xf32>
    %62 = vector.extract_strided_slice %0 {offsets = [6, 0], sizes = [1, 128], strides = [1, 1]} : vector<8x128xf32> to vector<1x128xf32>
    %63 = arith.truncf %61 : vector<32x32xf32> to vector<32x32xbf16>
    %c0_20 = arith.constant 0 : index
    %c0_21 = arith.constant 0 : index
    %64 = vector.load %arg5[%c0_20, %c0_21] : memref<32x128xbf16, #tpu.memory_space<vmem>>, vector<32x128xbf16>
    %cst_22 = arith.constant dense<0.000000e+00> : vector<32x128xf32>
    %65 = tpu.matmul %63, %64, %cst_22 {dimension_numbers = #tpu.dot_dimension_numbers<[1], [0], [0], [1], [0, 0, 1, 1], [], []>} : vector<32x32xbf16>, vector<32x128xbf16>, vector<32x128xf32> -> vector<32x128xf32>
    %66 = vector.broadcast %62 : vector<1x128xf32> to vector<32x128xf32>
    %67 = arith.addf %65, %66 : vector<32x128xf32>
    %c0_23 = arith.constant 0 : index
    %c0_24 = arith.constant 0 : index
    %68 = vector.load %arg6[%c0_23, %c0_24] : memref<32x128xf32, #tpu.memory_space<vmem>>, vector<32x128xf32>
    tpu.vector_store %arg6[%c0_23, %c0_24], %67 {strides = array<i32>} : memref<32x128xf32, #tpu.memory_space<vmem>>, vector<32x128xf32>,
    return
  }
  func.func @transform_0(%arg0: i32) -> (i32, i32) {
    %c0_i32 = arith.constant 0 : i32
    %c0_i32_0 = arith.constant 0 : i32
    return %arg0, %c0_i32 : i32, i32
  }
  func.func @transform_1(%arg0: i32) -> (i32, i32) {
    %c0_i32 = arith.constant 0 : i32
    %c0_i32_0 = arith.constant 0 : i32
    %c0_i32_1 = arith.constant 0 : i32
    return %c0_i32, %c0_i32_0 : i32, i32
  }
  func.func @transform_2(%arg0: i32) -> (i32, i32) {
    %c0_i32 = arith.constant 0 : i32
    %c0_i32_0 = arith.constant 0 : i32
    %c0_i32_1 = arith.constant 0 : i32
    return %c0_i32, %c0_i32_0 : i32, i32
  }
  func.func @transform_3(%arg0: i32) -> (i32, i32) {
    %c0_i32 = arith.constant 0 : i32
    %c0_i32_0 = arith.constant 0 : i32
    %c0_i32_1 = arith.constant 0 : i32
    return %c0_i32, %c0_i32_0 : i32, i32
  }
  func.func @transform_4(%arg0: i32) -> (i32, i32) {
    %c0_i32 = arith.constant 0 : i32
    %c0_i32_0 = arith.constant 0 : i32
    %c0_i32_1 = arith.constant 0 : i32
    return %c0_i32, %c0_i32_0 : i32, i32
  }
  func.func @transform_5(%arg0: i32) -> (i32, i32) {
    %c0_i32 = arith.constant 0 : i32
    %c0_i32_0 = arith.constant 0 : i32
    return %arg0, %c0_i32 : i32, i32
  }
}

</mosaic_0001>

<bundles_post_ra>
// kernel: _mlp_pallas.1
= control target key start
LH: loop header
LB: loop body
LE: loop exit
PB: predicated region body
PF: predicated region fallthrough
CT: control target
= control target key end

     0   :  { %s793_s18 = smov 0   ;;  %s920_s0 = inlined_call_operand.vmem [shape: f32[64,32], index: 0, kind: input, shape index: {}]   ;;  %s921_s1 = inlined_call_operand.vmem [shape: f32[8,128], index: 1, kind: input, shape index: {}]   ;;  %s922_s2 = inlined_call_operand.vmem [shape: bf16[32,64], index: 2, kind: input, shape index: {}]   ;;  %s923_s3 = inlined_call_operand.vmem [shape: bf16[64,32], index: 3, kind: input, shape index: {}]   ;;  %s924_s4 = inlined_call_operand.vmem [shape: bf16[32,128], index: 4, kind: input, shape index: {}]   ;;  %s925_s5 = inlined_call_operand.vmem [shape: f32[64,128], index: 5, kind: output, shape index: {}]  }
   0x1 LB: > { %s662_s19 = sadd.s32 4294967295, %s759_s18   ;;  %p666_p0 = scmp.ge.s32.totalorder %s759_s18, 1  ;;  %s759_s18 = sphi %s793_s18, %s15_s18  }
   0x2   : > { %p188_p1 = scmp.lt.s32.totalorder %s759_s18, 3 }
   0x4   : > { %p189_p2 = pnand %p666_p0, %p188_p1 }
   0x5   : > { %s667_s20 = sshll.u32 (!%p189_p2), %s662_s19, 2 }
   0x6   : > { %192 = sbr.rel (%p189_p2) target bundleno = 1007 (0x3ef), region = 40  ;;  %p217_p3 = scmp.lt.s32.totalorder (!%p189_p2), %s667_s20, 7 }
   0xb   : > { %s927_s20 = smov (!%p217_p3, %s667_s20), 7  ;;  %vm234_vm0 = vcmask 261120   ;;  %v761_v8 = vmov 32.0   ;;  %v712_v35 = vld [vmem:[%s922_s2 + $0x8] sm:$0xff]  ;;  %v711_v39 = vld [vmem:[%s922_s2] sm:$0xff]  ;;  %vm388_vm14 = vcmask 523264  }
   0xc   : > { %s668_s21 = sshll.u32 %s927_s20, 3  ;;  %733 = vrcp.f32 %v761_v8  ;;  %371 = vmatpush.bf16.msra.mxu0 %v712_v35 }
   0xd   : > { %s220_s24 = scalar_lea.vmem %s920_s0, %s668_s21  ;;  %s226_s23 = scalar_lea.vmem %s925_s5, %s668_s21 }
   0xe   : > { %v232_v0 = vld [vmem:[%s220_s24 + $0x10] sm:$0xff]  ;;  %v230_v1 = vld [vmem:[%s220_s24] sm:$0xff]  ;;  %v233_v4 = vld [vmem:[%s220_s24 + $0x18] sm:$0xff] }
   0xf   : > { %v241_v2 = vsel %vm234_vm0, %v232_v0, 0.0  ;;  %v235_v3 = vsel %vm234_vm0, %v230_v1, 0.0  ;;  %v231_v5 = vld [vmem:[%s220_s24 + $0x8] sm:$0xff]  ;;  %v244_v6 = vsel %vm234_vm0, %v233_v4, 0.0 }
  0x10   : > { %242 = vadd.xlane.f32.xlu1 %v241_v2  ;;  %236 = vadd.xlane.f32.xlu0 %v235_v3  ;;  %v238_v7 = vsel %vm234_vm0, %v231_v5, 0.0  ;;  %v838_v2 = vld [vmem:[%s921_s1] sm:$0xff] }
  0x11   : > { %372 = vmatpush.bf16.msra.mxu0 %v711_v39 }
  0x12   : > { %v734_v9 = vpop.eup %733 }
  0x13   : > { %v248_v10 = vmul.f32 32.0, %v734_v9  ;;  %vm252_vm1 = vweird.f32 %v734_v9 }
  0x15   : > { %v249_v11 = vsub.f32 1.0, %v248_v10 }
  0x17   : > { %v250_v12 = vmul.f32 %v734_v9, %v249_v11 }
  0x18   : > { %245 = vadd.xlane.f32.xlu1 %v244_v6  ;;  %239 = vadd.xlane.f32.xlu0 %v238_v7  ;;  %v330_v6 = vperm.slane %v838_v2, 0 }
  0x19   : > { %v251_v13 = vadd.f32 %v734_v9, %v250_v12 }
  0x1b   : > { %v253_v14 = vsel %vm252_vm1, %v734_v9, %v251_v13  ;;  %v335_v13 = vperm.slane %v838_v2, 1 }
  0x83   : > { %v243_v15 = vpop.xlane.xlu1 %242  ;;  %v237_v16 = vpop.xlane.xlu0 %236 }
  0x84   : > { %v256_v17 = vmul.f32 %v253_v14, %v243_v15  ;;  %v254_v18 = vmul.f32 %v253_v14, %v237_v16 }
  0x86   : > { %v813_v19 = vsub.f32 %v232_v0, %v256_v17  ;;  %v815_v20 = vsub.f32 %v230_v1, %v254_v18 }
  0x88   : > { %v264_v21 = vmul.f32 %v813_v19, %v813_v19  ;;  %v262_v22 = vmul.f32 %v815_v20, %v815_v20 }
  0x8a   : > { %v272_v23 = vsel %vm234_vm0, %v264_v21, 0.0  ;;  %v266_v24 = vsel %vm234_vm0, %v262_v22, 0.0 }
  0x8b   : > { %v246_v25 = vpop.xlane.xlu1 %245  ;;  %273 = vadd.xlane.f32.xlu0 %v272_v23  ;;  %267 = vadd.xlane.f32.xlu2 %v266_v24  ;;  %v240_v26 = vpop.xlane.xlu0 %239 }
  0x8c   : > { %v257_v27 = vmul.f32 %v253_v14, %v246_v25  ;;  %v255_v28 = vmul.f32 %v253_v14, %v240_v26 }
  0x8e   : > { %v823_v29 = vsub.f32 %v233_v4, %v257_v27  ;;  %v259_v30 = vsub.f32 %v231_v5, %v255_v28 }
  0x90   : > { %v265_v31 = vmul.f32 %v823_v29, %v823_v29  ;;  %v263_v32 = vmul.f32 %v259_v30, %v259_v30 }
  0x92   : > { %v275_v33 = vsel %vm234_vm0, %v265_v31, 0.0  ;;  %v269_v34 = vsel %vm234_vm0, %v263_v32, 0.0  ;;  %v346_v32 = vperm.slane %v838_v2, 2 }
  0x93   : > { %276 = vadd.xlane.f32.xlu1 %v275_v33  ;;  %270 = vadd.xlane.f32.xlu2 %v269_v34 }
  0xfe   : > { %v268_v36 = vpop.xlane.xlu2 %267  ;;  %v274_v38 = vpop.xlane.xlu0 %273 }
  0xff   : > { %v278_v37 = vmul.f32 %v268_v36, %v253_v14  ;;  %v280_v41 = vmul.f32 %v274_v38, %v253_v14 }
 0x101   : > { %v282_v40 = vadd.f32 1e-05, %v278_v37  ;;  %v284_v42 = vadd.f32 1e-05, %v280_v41 }
 0x103   : > { %735 = vrsqrt.f32 %v282_v40  ;;  %vm292_vm3 = vweird.f32 %v282_v40  ;;  %vm312_vm10 = vweird.f32 %v284_v42 }
 0x104   : > { %737 = vrsqrt.f32 %v284_v42 }
 0x106   : > { %v277_v43 = vpop.xlane.xlu1 %276  ;;  %v271_v44 = vpop.xlane.xlu2 %270 }
 0x107   : > { %v281_v45 = vmul.f32 %v277_v43, %v253_v14  ;;  %v279_v46 = vmul.f32 %v271_v44, %v253_v14 }
 0x109   : > { %v736_v47 = vpop.eup %735  ;;  %v285_v48 = vadd.f32 1e-05, %v281_v45  ;;  %v283_v49 = vadd.f32 1e-05, %v279_v46 }
 0x10a   : > { %v287_v50 = vmul.f32 %v736_v47, %v282_v40  ;;  %v738_v53 = vpop.eup %737  ;;  %vm293_vm2 = vweird.f32 %v736_v47 }
 0x10b   : > { %739 = vrsqrt.f32 %v285_v48  ;;  %v307_v59 = vmul.f32 %v738_v53, %v284_v42  ;;  %vm294_vm4 = vmor %vm292_vm3, %vm293_vm2  ;;  %vm302_vm6 = vweird.f32 %v283_v49  ;;  %vm322_vm8 = vweird.f32 %v285_v48 }
 0x10c   : > { %v288_v51 = vmul.f32 %v736_v47, %v287_v50  ;;  %741 = vrsqrt.f32 %v283_v49  ;;  %vm313_vm11 = vweird.f32 %v738_v53 }
 0x10d   : > { %v308_v0 = vmul.f32 %v738_v53, %v307_v59  ;;  %vm314_vm13 = vmor %vm312_vm10, %vm313_vm11 }
 0x10e   : > { %v289_v52 = vmul.f32 0.5, %v288_v51 }
 0x10f   : > { %v309_v7 = vmul.f32 0.5, %v308_v0 }
 0x110   : > { %v290_v54 = vsub.f32 1.5, %v289_v52 }
 0x111   : > { %v740_v55 = vpop.eup %739  ;;  %v310_v14 = vsub.f32 1.5, %v309_v7 }
 0x112   : > { %v742_v56 = vpop.eup %741  ;;  %v317_v57 = vmul.f32 %v740_v55, %v285_v48  ;;  %v291_v58 = vmul.f32 %v736_v47, %v290_v54  ;;  %vm323_vm9 = vweird.f32 %v740_v55 }
 0x113   : > { %v297_v60 = vmul.f32 %v742_v56, %v283_v49  ;;  %vm303_vm5 = vweird.f32 %v742_v56  ;;  %vm324_vm12 = vmor %vm322_vm8, %vm323_vm9 }
 0x114   : > { %v318_v61 = vmul.f32 %v740_v55, %v317_v57  ;;  %v295_v63 = vsel %vm294_vm4, %v736_v47, %v291_v58  ;;  %vm304_vm7 = vmor %vm302_vm6, %vm303_vm5  ;;  %v762_v47 = vmov 64.0  }
 0x115   : > { %v298_v62 = vmul.f32 %v742_v56, %v297_v60  ;;  %v326_v5 = vmul.f32 %v295_v63, %v815_v20  ;;  %v311_v20 = vmul.f32 %v738_v53, %v310_v14  ;;  %743 = vrcp.f32 %v762_v47 }
 0x116   : > { %v319_v3 = vmul.f32 0.5, %v318_v61 }
 0x117   : > { %v299_v1 = vmul.f32 0.5, %v298_v62  ;;  %v331_v12 = vmul.f32 %v330_v6, %v326_v5  ;;  %v315_v23 = vsel %vm314_vm13, %v738_v53, %v311_v20 }
 0x118   : > { %v320_v9 = vsub.f32 1.5, %v319_v3  ;;  %v328_v25 = vmul.f32 %v315_v23, %v813_v19 }
 0x119   : > { %v300_v4 = vsub.f32 1.5, %v299_v1  ;;  %v336_v17 = vadd.f32 %v335_v13, %v331_v12  ;;  %v715_v12 = vld [vmem:[%s923_s3 + $0x10] sm:$0xff] }
 0x11a   : > { %v321_v16 = vmul.f32 %v740_v55, %v320_v9  ;;  %v333_v27 = vmul.f32 %v330_v6, %v328_v25 }
 0x11b   : > { %v301_v8 = vmul.f32 %v742_v56, %v300_v4  ;;  %v744_v48 = vpop.eup %743 }
 0x11c   : > { %v325_v22 = vsel %vm324_vm12, %v740_v55, %v321_v16  ;;  %v402_v49 = vmul.f32 64.0, %v744_v48  ;;  %vm406_vm15 = vweird.f32 %v744_v48  ;;  %v713_v16 = vld [vmem:[%s923_s3] sm:$0xff] }
 0x11d   : > { %v305_v10 = vsel %vm304_vm7, %v742_v56, %v301_v8  ;;  %v329_v24 = vmul.f32 %v325_v22, %v823_v29 }
 0x11e   : > { %v327_v11 = vmul.f32 %v305_v10, %v259_v30  ;;  %v338_v30 = vadd.f32 %v335_v13, %v333_v27  ;;  %v403_v50 = vsub.f32 1.0, %v402_v49 }
 0x11f   : > { %v334_v26 = vmul.f32 %v330_v6, %v329_v24 }
 0x120   : > { %v332_v15 = vmul.f32 %v330_v6, %v327_v11  ;;  %v404_v51 = vmul.f32 %v744_v48, %v403_v50  ;;  %v716_v11 = vld [vmem:[%s923_s3 + $0x18] sm:$0xff] }
 0x121   : > { %v339_v28 = vadd.f32 %v335_v13, %v334_v26  ;;  %539 = vmatpush.bf16.msra.mxu1 %v716_v11  ;;  %719 = vmatpush.bf16.msra.mxu3 %v716_v11 }
 0x122   : > { %v337_v18 = vadd.f32 %v335_v13, %v332_v15  ;;  %v405_v52 = vadd.f32 %v744_v48, %v404_v51  ;;  %v714_v13 = vld [vmem:[%s923_s3 + $0x8] sm:$0xff] }
 0x123   : > { %v341_v31 = vpack.c.bf16 %v339_v28, %v338_v30 }
 0x124   : > { %v340_v21 = vpack.c.bf16 %v337_v18, %v336_v17  ;;  %v852_v53 = vsel %vm406_vm15, %v744_v48, %v405_v52  ;;  %v489_v48 = vperm.slane %v838_v2, 4 }
 0x125   : > { %540 = vmatpush.bf16.msra.mxu1 %v715_v12  ;;  %720 = vmatpush.bf16.msra.mxu3 %v715_v12 }
 0x126   : > { %679 = vmatmul.msk.bf16.vlgmr.msra.gmra.mxu0 %vm234_vm0, %v340_v21 }
 0x129   : > { %541 = vmatpush.bf16.msra.mxu1 %v714_v13  ;;  %721 = vmatpush.bf16.msra.mxu3 %v714_v13 }
 0x12d   : > { %542 = vmatpush.bf16.msra.mxu1 %v713_v16  ;;  %722 = vmatpush.bf16.msra.mxu3 %v713_v16 }
 0x136   : > { %680 = vmatmul.msk.bf16.gmra.mxu0 %vm234_vm0, %v341_v31 }
 0x1a3   : > { %v374_v33 = vpop.f32.mrf.mxu0 }
 0x1a4   : > { %v375_v34 = vadd.f32 %v374_v33, %v346_v32 }
 0x1a6   : > { %v384_v35 = vmax.f32 %v375_v34, 0.0 }
 0x1a8   : > { %v389_v36 = vsel %vm388_vm14, %v384_v35, 0.0 }
 0x1a9   : > { %390 = vadd.xlane.f32.xlu2 %v389_v36 }
 0x1ab   : > { %v376_v37 = vpop.f32.mrf.mxu0 }
 0x1ac   : > { %v377_v29 = vadd.f32 %v376_v37, %v346_v32 }
 0x1ae   : > { %v385_v38 = vmax.f32 %v377_v29, 0.0 }
 0x1b0   : > { %v392_v19 = vsel %vm388_vm14, %v385_v38, 0.0 }
 0x1b1   : > { %393 = vadd.xlane.f32.xlu0 %v392_v19 }
 0x1b3   : > { %v379_v39 = vpop.f32.mrf.mxu0 }
 0x1b4   : > { %v380_v40 = vadd.f32 %v379_v39, %v346_v32 }
 0x1b6   : > { %v386_v41 = vmax.f32 %v380_v40, 0.0 }
 0x1b8   : > { %v395_v42 = vsel %vm388_vm14, %v386_v41, 0.0 }
 0x1b9   : > { %396 = vadd.xlane.f32.xlu1 %v395_v42 }
 0x1bb   : > { %v381_v43 = vpop.f32.mrf.mxu0 }
 0x1bc   : > { %v382_v44 = vadd.f32 %v381_v43, %v346_v32 }
 0x1be   : > { %v387_v45 = vmax.f32 %v382_v44, 0.0 }
 0x1c0   : > { %v398_v46 = vsel %vm388_vm14, %v387_v45, 0.0 }
 0x1c1   : > { %399 = vadd.xlane.f32.xlu2 %v398_v46 }
 0x21c   : > { %v391_v54 = vpop.xlane.xlu2 %390 }
 0x21d   : > { %v408_v55 = vmul.f32 %v852_v53, %v391_v54 }
 0x21f   : > { %v855_v56 = vsub.f32 %v384_v35, %v408_v55 }
 0x221   : > { %v416_v57 = vmul.f32 %v855_v56, %v855_v56 }
 0x223   : > { %v420_v58 = vsel %vm388_vm14, %v416_v57, 0.0 }
 0x224   : > { %421 = vadd.xlane.f32.xlu0 %v420_v58  ;;  %v394_v59 = vpop.xlane.xlu0 %393 }
 0x225   : > { %v409_v60 = vmul.f32 %v852_v53, %v394_v59 }
 0x227   : > { %v861_v61 = vsub.f32 %v385_v38, %v409_v60 }
 0x229   : > { %v417_v62 = vmul.f32 %v861_v61, %v861_v61 }
 0x22b   : > { %v423_v63 = vsel %vm388_vm14, %v417_v62, 0.0 }
 0x22c   : > { %v397_v0 = vpop.xlane.xlu1 %396  ;;  %424 = vadd.xlane.f32.xlu1 %v423_v63 }
 0x22d   : > { %v410_v1 = vmul.f32 %v852_v53, %v397_v0 }
 0x22f   : > { %v867_v3 = vsub.f32 %v386_v41, %v410_v1  ;;  %v484_v41 = vperm.slane %v838_v2, 3 }
 0x231   : > { %v418_v4 = vmul.f32 %v867_v3, %v867_v3 }
 0x233   : > { %v426_v5 = vsel %vm388_vm14, %v418_v4, 0.0 }
 0x234   : > { %v400_v6 = vpop.xlane.xlu2 %399  ;;  %427 = vadd.xlane.f32.xlu2 %v426_v5 }
 0x235   : > { %v411_v7 = vmul.f32 %v852_v53, %v400_v6 }
 0x237   : > { %v873_v8 = vsub.f32 %v387_v45, %v411_v7 }
 0x239   : > { %v419_v9 = vmul.f32 %v873_v8, %v873_v8 }
 0x23b   : > { %v429_v10 = vsel %vm388_vm14, %v419_v9, 0.0 }
 0x23c   : > { %430 = vadd.xlane.f32.xlu0 %v429_v10  ;;  %v718_v10 = vld [vmem:[%s924_s4 + $0x8] sm:$0xff] }
 0x23d   : > { %589 = vmatpush.bf16.msra.mxu2 %v718_v10 }
 0x297   : > { %v422_v14 = vpop.xlane.xlu0 %421 }
 0x298   : > { %v432_v15 = vmul.f32 %v422_v14, %v852_v53 }
 0x29a   : > { %v436_v17 = vadd.f32 1e-05, %v432_v15 }
 0x29c   : > { %745 = vrsqrt.f32 %v436_v17  ;;  %vm446_vm2 = vweird.f32 %v436_v17 }
 0x29f   : > { %v425_v18 = vpop.xlane.xlu1 %424 }
 0x2a0   : > { %v433_v20 = vmul.f32 %v425_v18, %v852_v53 }
 0x2a2   : > { %v746_v21 = vpop.eup %745  ;;  %v437_v22 = vadd.f32 1e-05, %v433_v20 }
 0x2a3   : > { %v441_v23 = vmul.f32 %v746_v21, %v436_v17  ;;  %vm447_vm1 = vweird.f32 %v746_v21 }
 0x2a4   : > { %747 = vrsqrt.f32 %v437_v22  ;;  %vm448_vm3 = vmor %vm446_vm2, %vm447_vm1  ;;  %vm456_vm5 = vweird.f32 %v437_v22 }
 0x2a5   : > { %v442_v24 = vmul.f32 %v746_v21, %v441_v23 }
 0x2a7   : > { %v443_v25 = vmul.f32 0.5, %v442_v24  ;;  %v428_v26 = vpop.xlane.xlu2 %427 }
 0x2a8   : > { %v434_v27 = vmul.f32 %v428_v26, %v852_v53  ;;  %v564_v26 = vperm.slane %v838_v2, 6 }
 0x2a9   : > { %v444_v28 = vsub.f32 1.5, %v443_v25 }
 0x2aa   : > { %v748_v30 = vpop.eup %747  ;;  %v438_v31 = vadd.f32 1e-05, %v434_v27 }
 0x2ab   : > { %v445_v32 = vmul.f32 %v746_v21, %v444_v28  ;;  %v451_v33 = vmul.f32 %v748_v30, %v437_v22  ;;  %vm457_vm4 = vweird.f32 %v748_v30 }
 0x2ac   : > { %749 = vrsqrt.f32 %v438_v31  ;;  %vm458_vm6 = vmor %vm456_vm5, %vm457_vm4  ;;  %vm466_vm8 = vweird.f32 %v438_v31 }
 0x2ad   : > { %v452_v34 = vmul.f32 %v748_v30, %v451_v33  ;;  %v449_v35 = vsel %vm448_vm3, %v746_v21, %v445_v32 }
 0x2ae   : > { %v480_v39 = vmul.f32 %v449_v35, %v855_v56 }
 0x2af   : > { %v453_v36 = vmul.f32 0.5, %v452_v34  ;;  %v431_v37 = vpop.xlane.xlu0 %430 }
 0x2b0   : > { %v435_v29 = vmul.f32 %v431_v37, %v852_v53  ;;  %v485_v47 = vmul.f32 %v484_v41, %v480_v39 }
 0x2b1   : > { %v454_v38 = vsub.f32 1.5, %v453_v36 }
 0x2b2   : > { %v750_v19 = vpop.eup %749  ;;  %v439_v40 = vadd.f32 1e-05, %v435_v29  ;;  %v490_v53 = vadd.f32 %v489_v48, %v485_v47 }
 0x2b3   : > { %v455_v42 = vmul.f32 %v748_v30, %v454_v38  ;;  %v461_v43 = vmul.f32 %v750_v19, %v438_v31  ;;  %vm467_vm7 = vweird.f32 %v750_v19 }
 0x2b4   : > { %751 = vrsqrt.f32 %v439_v40  ;;  %vm468_vm9 = vmor %vm466_vm8, %vm467_vm7  ;;  %vm476_vm11 = vweird.f32 %v439_v40 }
 0x2b5   : > { %v459_v44 = vsel %vm458_vm6, %v748_v30, %v455_v42  ;;  %v462_v45 = vmul.f32 %v750_v19, %v461_v43 }
 0x2b6   : > { %v481_v46 = vmul.f32 %v459_v44, %v861_v61 }
 0x2b7   : > { %v463_v49 = vmul.f32 0.5, %v462_v45 }
 0x2b8   : > { %v486_v50 = vmul.f32 %v484_v41, %v481_v46 }
 0x2b9   : > { %v464_v51 = vsub.f32 1.5, %v463_v49 }
 0x2ba   : > { %v752_v52 = vpop.eup %751  ;;  %v491_v54 = vadd.f32 %v489_v48, %v486_v50 }
 0x2bb   : > { %v465_v55 = vmul.f32 %v750_v19, %v464_v51  ;;  %v471_v56 = vmul.f32 %v752_v52, %v439_v40  ;;  %vm477_vm10 = vweird.f32 %v752_v52 }
 0x2bc   : > { %v494_v57 = vpack.c.bf16 %v491_v54, %v490_v53  ;;  %vm478_vm12 = vmor %vm476_vm11, %vm477_vm10 }
 0x2bd   : > { %v472_v58 = vmul.f32 %v752_v52, %v471_v56  ;;  %v469_v59 = vsel %vm468_vm9, %v750_v19, %v465_v55 }
 0x2be   : > { %697 = vmatmul.msk.bf16.vlgmr.msra.gmra.mxu1 %vm388_vm14, %v494_v57  ;;  %v482_v62 = vmul.f32 %v469_v59, %v867_v3  ;;  %v717_v3 = vld [vmem:[%s924_s4] sm:$0xff] }
 0x2bf   : > { %v473_v60 = vmul.f32 0.5, %v472_v58  ;;  %590 = vmatpush.bf16.msra.mxu2 %v717_v3 }
 0x2c0   : > { %v487_v4 = vmul.f32 %v484_v41, %v482_v62 }
 0x2c1   : > { %v474_v61 = vsub.f32 1.5, %v473_v60 }
 0x2c2   : > { %v492_v6 = vadd.f32 %v489_v48, %v487_v4 }
 0x2c3   : > { %v475_v63 = vmul.f32 %v752_v52, %v474_v61 }
 0x2c5   : > { %v479_v0 = vsel %vm478_vm12, %v752_v52, %v475_v63 }
 0x2c6   : > { %v483_v1 = vmul.f32 %v479_v0, %v873_v8  ;;  %v504_v8 = vperm.slane %v838_v2, 5 }
 0x2c8   : > { %v488_v5 = vmul.f32 %v484_v41, %v483_v1 }
 0x2ca   : > { %v493_v7 = vadd.f32 %v489_v48, %v488_v5 }
 0x2cc   : > { %v495_v9 = vpack.c.bf16 %v493_v7, %v492_v6 }
 0x2ce   : > { %698 = vmatmul.msk.bf16.vlgmr.msra.gmra.mxu3 %vm388_vm14, %v495_v9 }
 0x33b   : > { %v544_v11 = vpop.f32.mrf.mxu1 }
 0x33c   : > { %v545_v12 = vadd.f32 %v544_v11, %v504_v8 }
 0x33e   : > { %v554_v15 = vmax.f32 %v545_v12, 0.0 }
 0x343   : > { %v546_v13 = vpop.f32.mrf.mxu1 }
 0x344   : > { %v547_v14 = vadd.f32 %v546_v13, %v504_v8 }
 0x346   : > { %v555_v16 = vmax.f32 %v547_v14, 0.0 }
 0x348   : > { %v558_v17 = vpack.c.bf16 %v555_v16, %v554_v15 }
 0x34a   : > { %707 = vmatmul.msk.bf16.vlgmr.msra.gmra.mxu2 %vm234_vm0, %v558_v17 }
 0x351   : > { %v549_v18 = vpop.f32.mrf.mxu3 }
 0x352   : > { %v550_v20 = vadd.f32 %v549_v18, %v504_v8 }
 0x354   : > { %v556_v23 = vmax.f32 %v550_v20, 0.0 }
 0x359   : > { %v551_v21 = vpop.f32.mrf.mxu3 }
 0x35a   : > { %v552_v22 = vadd.f32 %v551_v21, %v504_v8 }
 0x35c   : > { %v557_v24 = vmax.f32 %v552_v22, 0.0 }
 0x35e   : > { %v559_v25 = vpack.c.bf16 %v557_v24, %v556_v23 }
 0x360   : > { %708 = vmatmul.msk.bf16.gmra.mxu2 %vm234_vm0, %v559_v25 }
 0x3cd   : > { %v592_v27 = vpop.f32.mrf.mxu2 }
 0x3ce   : > { %v593_v28 = vadd.f32 %v592_v27, %v564_v26 }
 0x3d0   : > { %602 = vst [vmem:[%s226_s23] sm:$0xff] %v593_v28 }
 0x3d5   : > { %v594_v30 = vpop.f32.mrf.mxu2 }
 0x3d6   : > { %v595_v31 = vadd.f32 %v594_v30, %v564_v26 }
 0x3d8   : > { %603 = vst [vmem:[%s226_s23 + $0x8] sm:$0xff] %v595_v31 }
 0x3e3   : > { %v597_v32 = vpop.f32.mrf.mxu2 }
 0x3e4   : > { %v598_v33 = vadd.f32 %v597_v32, %v564_v26 }
 0x3e6   : > { %604 = vst [vmem:[%s226_s23 + $0x10] sm:$0xff] %v598_v33 }
 0x3eb   : > { %v599_v34 = vpop.f32.mrf.mxu2 }
 0x3ec   : > { %v600_v35 = vadd.f32 %v599_v34, %v564_v26 }
 0x3ee   : > { %605 = vst [vmem:[%s226_s23 + $0x18] sm:$0xff] %v600_v35 }
 0x3ef PF: > { %s15_s18 = sadd.s32 1, %s759_s18  }
 0x3f0   : > { %p12_p4 = scmp.ge.s32.totalorder %s15_s18, 4  }
 0x3f2   :  { %14 = sbr.rel (!%p12_p4) target bundleno = 1 (0x1), region = 70 }

// kernel: _mlp_pallas.1
= control target key start
LH: loop header
LB: loop body
LE: loop exit
PB: predicated region body
PF: predicated region fallthrough
CT: control target
= control target key end

     0   :  { %s793_s18 = smov 0   ;;  %s920_s0 = inlined_call_operand.vmem [shape: f32[64,32], index: 0, kind: input, shape index: {}]   ;;  %s921_s1 = inlined_call_operand.vmem [shape: f32[8,128], index: 1, kind: input, shape index: {}]   ;;  %s922_s2 = inlined_call_operand.vmem [shape: bf16[32,64], index: 2, kind: input, shape index: {}]   ;;  %s923_s3 = inlined_call_operand.vmem [shape: bf16[64,32], index: 3, kind: input, shape index: {}]   ;;  %s924_s4 = inlined_call_operand.vmem [shape: bf16[32,128], index: 4, kind: input, shape index: {}]   ;;  %s925_s5 = inlined_call_operand.vmem [shape: f32[64,128], index: 5, kind: output, shape index: {}]  }
   0x1 LB: > { %s662_s19 = sadd.s32 4294967295, %s759_s18   ;;  %p666_p0 = scmp.ge.s32.totalorder %s759_s18, 1  ;;  %s759_s18 = sphi %s793_s18, %s15_s18  }
   0x2   : > { %p188_p1 = scmp.lt.s32.totalorder %s759_s18, 3 }
   0x4   : > { %p189_p2 = pnand %p666_p0, %p188_p1 }
   0x5   : > { %s667_s20 = sshll.u32 (!%p189_p2), %s662_s19, 2 }
   0x6   : > { %192 = sbr.rel (%p189_p2) target bundleno = 1007 (0x3ef), region = 40  ;;  %p217_p3 = scmp.lt.s32.totalorder (!%p189_p2), %s667_s20, 7 }
   0xb   : > { %s927_s20 = smov (!%p217_p3, %s667_s20), 7  ;;  %vm234_vm0 = vcmask 261120   ;;  %v761_v8 = vmov 32.0   ;;  %v712_v35 = vld [vmem:[%s922_s2 + $0x8] sm:$0xff]  ;;  %v711_v39 = vld [vmem:[%s922_s2] sm:$0xff]  ;;  %vm388_vm14 = vcmask 523264  }
   0xc   : > { %s668_s21 = sshll.u32 %s927_s20, 3  ;;  %733 = vrcp.f32 %v761_v8  ;;  %371 = vmatpush.bf16.msra.mxu0 %v712_v35 }
   0xd   : > { %s220_s24 = scalar_lea.vmem %s920_s0, %s668_s21  ;;  %s226_s23 = scalar_lea.vmem %s925_s5, %s668_s21 }
   0xe   : > { %v232_v0 = vld [vmem:[%s220_s24 + $0x10] sm:$0xff]  ;;  %v230_v1 = vld [vmem:[%s220_s24] sm:$0xff]  ;;  %v233_v4 = vld [vmem:[%s220_s24 + $0x18] sm:$0xff] }
   0xf   : > { %v241_v2 = vsel %vm234_vm0, %v232_v0, 0.0  ;;  %v235_v3 = vsel %vm234_vm0, %v230_v1, 0.0  ;;  %v231_v5 = vld [vmem:[%s220_s24 + $0x8] sm:$0xff]  ;;  %v244_v6 = vsel %vm234_vm0, %v233_v4, 0.0 }
  0x10   : > { %242 = vadd.xlane.f32.xlu1 %v241_v2  ;;  %236 = vadd.xlane.f32.xlu0 %v235_v3  ;;  %v238_v7 = vsel %vm234_vm0, %v231_v5, 0.0  ;;  %v838_v2 = vld [vmem:[%s921_s1] sm:$0xff] }
  0x11   : > { %372 = vmatpush.bf16.msra.mxu0 %v711_v39 }
  0x12   : > { %v734_v9 = vpop.eup %733 }
  0x13   : > { %v248_v10 = vmul.f32 32.0, %v734_v9  ;;  %vm252_vm1 = vweird.f32 %v734_v9 }
  0x15   : > { %v249_v11 = vsub.f32 1.0, %v248_v10 }
  0x17   : > { %v250_v12 = vmul.f32 %v734_v9, %v249_v11 }
  0x18   : > { %245 = vadd.xlane.f32.xlu1 %v244_v6  ;;  %239 = vadd.xlane.f32.xlu0 %v238_v7  ;;  %v330_v6 = vperm.slane %v838_v2, 0 }
  0x19   : > { %v251_v13 = vadd.f32 %v734_v9, %v250_v12 }
  0x1b   : > { %v253_v14 = vsel %vm252_vm1, %v734_v9, %v251_v13  ;;  %v335_v13 = vperm.slane %v838_v2, 1 }
  0x83   : > { %v243_v15 = vpop.xlane.xlu1 %242  ;;  %v237_v16 = vpop.xlane.xlu0 %236 }
  0x84   : > { %v256_v17 = vmul.f32 %v253_v14, %v243_v15  ;;  %v254_v18 = vmul.f32 %v253_v14, %v237_v16 }
  0x86   : > { %v813_v19 = vsub.f32 %v232_v0, %v256_v17  ;;  %v815_v20 = vsub.f32 %v230_v1, %v254_v18 }
  0x88   : > { %v264_v21 = vmul.f32 %v813_v19, %v813_v19  ;;  %v262_v22 = vmul.f32 %v815_v20, %v815_v20 }
  0x8a   : > { %v272_v23 = vsel %vm234_vm0, %v264_v21, 0.0  ;;  %v266_v24 = vsel %vm234_vm0, %v262_v22, 0.0 }
  0x8b   : > { %v246_v25 = vpop.xlane.xlu1 %245  ;;  %273 = vadd.xlane.f32.xlu0 %v272_v23  ;;  %267 = vadd.xlane.f32.xlu2 %v266_v24  ;;  %v240_v26 = vpop.xlane.xlu0 %239 }
  0x8c   : > { %v257_v27 = vmul.f32 %v253_v14, %v246_v25  ;;  %v255_v28 = vmul.f32 %v253_v14, %v240_v26 }
  0x8e   : > { %v823_v29 = vsub.f32 %v233_v4, %v257_v27  ;;  %v259_v30 = vsub.f32 %v231_v5, %v255_v28 }
  0x90   : > { %v265_v31 = vmul.f32 %v823_v29, %v823_v29  ;;  %v263_v32 = vmul.f32 %v259_v30, %v259_v30 }
  0x92   : > { %v275_v33 = vsel %vm234_vm0, %v265_v31, 0.0  ;;  %v269_v34 = vsel %vm234_vm0, %v263_v32, 0.0  ;;  %v346_v32 = vperm.slane %v838_v2, 2 }
  0x93   : > { %276 = vadd.xlane.f32.xlu1 %v275_v33  ;;  %270 = vadd.xlane.f32.xlu2 %v269_v34 }
  0xfe   : > { %v268_v36 = vpop.xlane.xlu2 %267  ;;  %v274_v38 = vpop.xlane.xlu0 %273 }
  0xff   : > { %v278_v37 = vmul.f32 %v268_v36, %v253_v14  ;;  %v280_v41 = vmul.f32 %v274_v38, %v253_v14 }
 0x101   : > { %v282_v40 = vadd.f32 1e-05, %v278_v37  ;;  %v284_v42 = vadd.f32 1e-05, %v280_v41 }
 0x103   : > { %735 = vrsqrt.f32 %v282_v40  ;;  %vm292_vm3 = vweird.f32 %v282_v40  ;;  %vm312_vm10 = vweird.f32 %v284_v42 }
 0x104   : > { %737 = vrsqrt.f32 %v284_v42 }
 0x106   : > { %v277_v43 = vpop.xlane.xlu1 %276  ;;  %v271_v44 = vpop.xlane.xlu2 %270 }
 0x107   : > { %v281_v45 = vmul.f32 %v277_v43, %v253_v14  ;;  %v279_v46 = vmul.f32 %v271_v44, %v253_v14 }
 0x109   : > { %v736_v47 = vpop.eup %735  ;;  %v285_v48 = vadd.f32 1e-05, %v281_v45  ;;  %v283_v49 = vadd.f32 1e-05, %v279_v46 }
 0x10a   : > { %v287_v50 = vmul.f32 %v736_v47, %v282_v40  ;;  %v738_v53 = vpop.eup %737  ;;  %vm293_vm2 = vweird.f32 %v736_v47 }
 0x10b   : > { %739 = vrsqrt.f32 %v285_v48  ;;  %v307_v59 = vmul.f32 %v738_v53, %v284_v42  ;;  %vm294_vm4 = vmor %vm292_vm3, %vm293_vm2  ;;  %vm302_vm6 = vweird.f32 %v283_v49  ;;  %vm322_vm8 = vweird.f32 %v285_v48 }
 0x10c   : > { %v288_v51 = vmul.f32 %v736_v47, %v287_v50  ;;  %741 = vrsqrt.f32 %v283_v49  ;;  %vm313_vm11 = vweird.f32 %v738_v53 }
 0x10d   : > { %v308_v0 = vmul.f32 %v738_v53, %v307_v59  ;;  %vm314_vm13 = vmor %vm312_vm10, %vm313_vm11 }
 0x10e   : > { %v289_v52 = vmul.f32 0.5, %v288_v51 }
 0x10f   : > { %v309_v7 = vmul.f32 0.5, %v308_v0 }
 0x110   : > { %v290_v54 = vsub.f32 1.5, %v289_v52 }
 0x111   : > { %v740_v55 = vpop.eup %739  ;;  %v310_v14 = vsub.f32 1.5, %v309_v7 }
 0x112   : > { %v742_v56 = vpop.eup %741  ;;  %v317_v57 = vmul.f32 %v740_v55, %v285_v48  ;;  %v291_v58 = vmul.f32 %v736_v47, %v290_v54  ;;  %vm323_vm9 = vweird.f32 %v740_v55 }
 0x113   : > { %v297_v60 = vmul.f32 %v742_v56, %v283_v49  ;;  %vm303_vm5 = vweird.f32 %v742_v56  ;;  %vm324_vm12 = vmor %vm322_vm8, %vm323_vm9 }
 0x114   : > { %v318_v61 = vmul.f32 %v740_v55, %v317_v57  ;;  %v295_v63 = vsel %vm294_vm4, %v736_v47, %v291_v58  ;;  %vm304_vm7 = vmor %vm302_vm6, %vm303_vm5  ;;  %v762_v47 = vmov 64.0  }
 0x115   : > { %v298_v62 = vmul.f32 %v742_v56, %v297_v60  ;;  %v326_v5 = vmul.f32 %v295_v63, %v815_v20  ;;  %v311_v20 = vmul.f32 %v738_v53, %v310_v14  ;;  %743 = vrcp.f32 %v762_v47 }
 0x116   : > { %v319_v3 = vmul.f32 0.5, %v318_v61 }
 0x117   : > { %v299_v1 = vmul.f32 0.5, %v298_v62  ;;  %v331_v12 = vmul.f32 %v330_v6, %v326_v5  ;;  %v315_v23 = vsel %vm314_vm13, %v738_v53, %v311_v20 }
 0x118   : > { %v320_v9 = vsub.f32 1.5, %v319_v3  ;;  %v328_v25 = vmul.f32 %v315_v23, %v813_v19 }
 0x119   : > { %v300_v4 = vsub.f32 1.5, %v299_v1  ;;  %v336_v17 = vadd.f32 %v335_v13, %v331_v12  ;;  %v715_v12 = vld [vmem:[%s923_s3 + $0x10] sm:$0xff] }
 0x11a   : > { %v321_v16 = vmul.f32 %v740_v55, %v320_v9  ;;  %v333_v27 = vmul.f32 %v330_v6, %v328_v25 }
 0x11b   : > { %v301_v8 = vmul.f32 %v742_v56, %v300_v4  ;;  %v744_v48 = vpop.eup %743 }
 0x11c   : > { %v325_v22 = vsel %vm324_vm12, %v740_v55, %v321_v16  ;;  %v402_v49 = vmul.f32 64.0, %v744_v48  ;;  %vm406_vm15 = vweird.f32 %v744_v48  ;;  %v713_v16 = vld [vmem:[%s923_s3] sm:$0xff] }
 0x11d   : > { %v305_v10 = vsel %vm304_vm7, %v742_v56, %v301_v8  ;;  %v329_v24 = vmul.f32 %v325_v22, %v823_v29 }
 0x11e   : > { %v327_v11 = vmul.f32 %v305_v10, %v259_v30  ;;  %v338_v30 = vadd.f32 %v335_v13, %v333_v27  ;;  %v403_v50 = vsub.f32 1.0, %v402_v49 }
 0x11f   : > { %v334_v26 = vmul.f32 %v330_v6, %v329_v24 }
 0x120   : > { %v332_v15 = vmul.f32 %v330_v6, %v327_v11  ;;  %v404_v51 = vmul.f32 %v744_v48, %v403_v50  ;;  %v716_v11 = vld [vmem:[%s923_s3 + $0x18] sm:$0xff] }
 0x121   : > { %v339_v28 = vadd.f32 %v335_v13, %v334_v26  ;;  %539 = vmatpush.bf16.msra.mxu1 %v716_v11  ;;  %719 = vmatpush.bf16.msra.mxu3 %v716_v11 }
 0x122   : > { %v337_v18 = vadd.f32 %v335_v13, %v332_v15  ;;  %v405_v52 = vadd.f32 %v744_v48, %v404_v51  ;;  %v714_v13 = vld [vmem:[%s923_s3 + $0x8] sm:$0xff] }
 0x123   : > { %v341_v31 = vpack.c.bf16 %v339_v28, %v338_v30 }
 0x124   : > { %v340_v21 = vpack.c.bf16 %v337_v18, %v336_v17  ;;  %v852_v53 = vsel %vm406_vm15, %v744_v48, %v405_v52  ;;  %v489_v48 = vperm.slane %v838_v2, 4 }
 0x125   : > { %540 = vmatpush.bf16.msra.mxu1 %v715_v12  ;;  %720 = vmatpush.bf16.msra.mxu3 %v715_v12 }
 0x126   : > { %679 = vmatmul.msk.bf16.vlgmr.msra.gmra.mxu0 %vm234_vm0, %v340_v21 }
 0x129   : > { %541 = vmatpush.bf16.msra.mxu1 %v714_v13  ;;  %721 = vmatpush.bf16.msra.mxu3 %v714_v13 }
 0x12d   : > { %542 = vmatpush.bf16.msra.mxu1 %v713_v16  ;;  %722 = vmatpush.bf16.msra.mxu3 %v713_v16 }
 0x136   : > { %680 = vmatmul.msk.bf16.gmra.mxu0 %vm234_vm0, %v341_v31 }
 0x1a3   : > { %v374_v33 = vpop.f32.mrf.mxu0 }
 0x1a4   : > { %v375_v34 = vadd.f32 %v374_v33, %v346_v32 }
 0x1a6   : > { %v384_v35 = vmax.f32 %v375_v34, 0.0 }
 0x1a8   : > { %v389_v36 = vsel %vm388_vm14, %v384_v35, 0.0 }
 0x1a9   : > { %390 = vadd.xlane.f32.xlu2 %v389_v36 }
 0x1ab   : > { %v376_v37 = vpop.f32.mrf.mxu0 }
 0x1ac   : > { %v377_v29 = vadd.f32 %v376_v37, %v346_v32 }
 0x1ae   : > { %v385_v38 = vmax.f32 %v377_v29, 0.0 }
 0x1b0   : > { %v392_v19 = vsel %vm388_vm14, %v385_v38, 0.0 }
 0x1b1   : > { %393 = vadd.xlane.f32.xlu0 %v392_v19 }
 0x1b3   : > { %v379_v39 = vpop.f32.mrf.mxu0 }
 0x1b4   : > { %v380_v40 = vadd.f32 %v379_v39, %v346_v32 }
 0x1b6   : > { %v386_v41 = vmax.f32 %v380_v40, 0.0 }
 0x1b8   : > { %v395_v42 = vsel %vm388_vm14, %v386_v41, 0.0 }
 0x1b9   : > { %396 = vadd.xlane.f32.xlu1 %v395_v42 }
 0x1bb   : > { %v381_v43 = vpop.f32.mrf.mxu0 }
 0x1bc   : > { %v382_v44 = vadd.f32 %v381_v43, %v346_v32 }
 0x1be   : > { %v387_v45 = vmax.f32 %v382_v44, 0.0 }
 0x1c0   : > { %v398_v46 = vsel %vm388_vm14, %v387_v45, 0.0 }
 0x1c1   : > { %399 = vadd.xlane.f32.xlu2 %v398_v46 }
 0x21c   : > { %v391_v54 = vpop.xlane.xlu2 %390 }
 0x21d   : > { %v408_v55 = vmul.f32 %v852_v53, %v391_v54 }
 0x21f   : > { %v855_v56 = vsub.f32 %v384_v35, %v408_v55 }
 0x221   : > { %v416_v57 = vmul.f32 %v855_v56, %v855_v56 }
 0x223   : > { %v420_v58 = vsel %vm388_vm14, %v416_v57, 0.0 }
 0x224   : > { %421 = vadd.xlane.f32.xlu0 %v420_v58  ;;  %v394_v59 = vpop.xlane.xlu0 %393 }
 0x225   : > { %v409_v60 = vmul.f32 %v852_v53, %v394_v59 }
 0x227   : > { %v861_v61 = vsub.f32 %v385_v38, %v409_v60 }
 0x229   : > { %v417_v62 = vmul.f32 %v861_v61, %v861_v61 }
 0x22b   : > { %v423_v63 = vsel %vm388_vm14, %v417_v62, 0.0 }
 0x22c   : > { %v397_v0 = vpop.xlane.xlu1 %396  ;;  %424 = vadd.xlane.f32.xlu1 %v423_v63 }
 0x22d   : > { %v410_v1 = vmul.f32 %v852_v53, %v397_v0 }
 0x22f   : > { %v867_v3 = vsub.f32 %v386_v41, %v410_v1  ;;  %v484_v41 = vperm.slane %v838_v2, 3 }
 0x231   : > { %v418_v4 = vmul.f32 %v867_v3, %v867_v3 }
 0x233   : > { %v426_v5 = vsel %vm388_vm14, %v418_v4, 0.0 }
 0x234   : > { %v400_v6 = vpop.xlane.xlu2 %399  ;;  %427 = vadd.xlane.f32.xlu2 %v426_v5 }
 0x235   : > { %v411_v7 = vmul.f32 %v852_v53, %v400_v6 }
 0x237   : > { %v873_v8 = vsub.f32 %v387_v45, %v411_v7 }
 0x239   : > { %v419_v9 = vmul.f32 %v873_v8, %v873_v8 }
 0x23b   : > { %v429_v10 = vsel %vm388_vm14, %v419_v9, 0.0 }
 0x23c   : > { %430 = vadd.xlane.f32.xlu0 %v429_v10  ;;  %v718_v10 = vld [vmem:[%s924_s4 + $0x8] sm:$0xff] }
 0x23d   : > { %589 = vmatpush.bf16.msra.mxu2 %v718_v10 }
 0x297   : > { %v422_v14 = vpop.xlane.xlu0 %421 }
 0x298   : > { %v432_v15 = vmul.f32 %v422_v14, %v852_v53 }
 0x29a   : > { %v436_v17 = vadd.f32 1e-05, %v432_v15 }
 0x29c   : > { %745 = vrsqrt.f32 %v436_v17  ;;  %vm446_vm2 = vweird.f32 %v436_v17 }
 0x29f   : > { %v425_v18 = vpop.xlane.xlu1 %424 }
 0x2a0   : > { %v433_v20 = vmul.f32 %v425_v18, %v852_v53 }
 0x2a2   : > { %v746_v21 = vpop.eup %745  ;;  %v437_v22 = vadd.f32 1e-05, %v433_v20 }
 0x2a3   : > { %v441_v23 = vmul.f32 %v746_v21, %v436_v17  ;;  %vm447_vm1 = vweird.f32 %v746_v21 }
 0x2a4   : > { %747 = vrsqrt.f32 %v437_v22  ;;  %vm448_vm3 = vmor %vm446_vm2, %vm447_vm1  ;;  %vm456_vm5 = vweird.f32 %v437_v22 }
 0x2a5   : > { %v442_v24 = vmul.f32 %v746_v21, %v441_v23 }
 0x2a7   : > { %v443_v25 = vmul.f32 0.5, %v442_v24  ;;  %v428_v26 = vpop.xlane.xlu2 %427 }
 0x2a8   : > { %v434_v27 = vmul.f32 %v428_v26, %v852_v53  ;;  %v564_v26 = vperm.slane %v838_v2, 6 }
 0x2a9   : > { %v444_v28 = vsub.f32 1.5, %v443_v25 }
 0x2aa   : > { %v748_v30 = vpop.eup %747  ;;  %v438_v31 = vadd.f32 1e-05, %v434_v27 }
 0x2ab   : > { %v445_v32 = vmul.f32 %v746_v21, %v444_v28  ;;  %v451_v33 = vmul.f32 %v748_v30, %v437_v22  ;;  %vm457_vm4 = vweird.f32 %v748_v30 }
 0x2ac   : > { %749 = vrsqrt.f32 %v438_v31  ;;  %vm458_vm6 = vmor %vm456_vm5, %vm457_vm4  ;;  %vm466_vm8 = vweird.f32 %v438_v31 }
 0x2ad   : > { %v452_v34 = vmul.f32 %v748_v30, %v451_v33  ;;  %v449_v35 = vsel %vm448_vm3, %v746_v21, %v445_v32 }
 0x2ae   : > { %v480_v39 = vmul.f32 %v449_v35, %v855_v56 }
 0x2af   : > { %v453_v36 = vmul.f32 0.5, %v452_v34  ;;  %v431_v37 = vpop.xlane.xlu0 %430 }
 0x2b0   : > { %v435_v29 = vmul.f32 %v431_v37, %v852_v53  ;;  %v485_v47 = vmul.f32 %v484_v41, %v480_v39 }
 0x2b1   : > { %v454_v38 = vsub.f32 1.5, %v453_v36 }
 0x2b2   : > { %v750_v19 = vpop.eup %749  ;;  %v439_v40 = vadd.f32 1e-05, %v435_v29  ;;  %v490_v53 = vadd.f32 %v489_v48, %v485_v47 }
 0x2b3   : > { %v455_v42 = vmul.f32 %v748_v30, %v454_v38  ;;  %v461_v43 = vmul.f32 %v750_v19, %v438_v31  ;;  %vm467_vm7 = vweird.f32 %v750_v19 }
 0x2b4   : > { %751 = vrsqrt.f32 %v439_v40  ;;  %vm468_vm9 = vmor %vm466_vm8, %vm467_vm7  ;;  %vm476_vm11 = vweird.f32 %v439_v40 }
 0x2b5   : > { %v459_v44 = vsel %vm458_vm6, %v748_v30, %v455_v42  ;;  %v462_v45 = vmul.f32 %v750_v19, %v461_v43 }
 0x2b6   : > { %v481_v46 = vmul.f32 %v459_v44, %v861_v61 }
 0x2b7   : > { %v463_v49 = vmul.f32 0.5, %v462_v45 }
 0x2b8   : > { %v486_v50 = vmul.f32 %v484_v41, %v481_v46 }
 0x2b9   : > { %v464_v51 = vsub.f32 1.5, %v463_v49 }
 0x2ba   : > { %v752_v52 = vpop.eup %751  ;;  %v491_v54 = vadd.f32 %v489_v48, %v486_v50 }
 0x2bb   : > { %v465_v55 = vmul.f32 %v750_v19, %v464_v51  ;;  %v471_v56 = vmul.f32 %v752_v52, %v439_v40  ;;  %vm477_vm10 = vweird.f32 %v752_v52 }
 0x2bc   : > { %v494_v57 = vpack.c.bf16 %v491_v54, %v490_v53  ;;  %vm478_vm12 = vmor %vm476_vm11, %vm477_vm10 }
 0x2bd   : > { %v472_v58 = vmul.f32 %v752_v52, %v471_v56  ;;  %v469_v59 = vsel %vm468_vm9, %v750_v19, %v465_v55 }
 0x2be   : > { %697 = vmatmul.msk.bf16.vlgmr.msra.gmra.mxu1 %vm388_vm14, %v494_v57  ;;  %v482_v62 = vmul.f32 %v469_v59, %v867_v3  ;;  %v717_v3 = vld [vmem:[%s924_s4] sm:$0xff] }
 0x2bf   : > { %v473_v60 = vmul.f32 0.5, %v472_v58  ;;  %590 = vmatpush.bf16.msra.mxu2 %v717_v3 }
 0x2c0   : > { %v487_v4 = vmul.f32 %v484_v41, %v482_v62 }
 0x2c1   : > { %v474_v61 = vsub.f32 1.5, %v473_v60 }
 0x2c2   : > { %v492_v6 = vadd.f32 %v489_v48, %v487_v4 }
 0x2c3   : > { %v475_v63 = vmul.f32 %v752_v52, %v474_v61 }
 0x2c5   : > { %v479_v0 = vsel %vm478_vm12, %v752_v52, %v475_v63 }
 0x2c6   : > { %v483_v1 = vmul.f32 %v479_v0, %v873_v8  ;;  %v504_v8 = vperm.slane %v838_v2, 5 }
 0x2c8   : > { %v488_v5 = vmul.f32 %v484_v41, %v483_v1 }
 0x2ca   : > { %v493_v7 = vadd.f32 %v489_v48, %v488_v5 }
 0x2cc   : > { %v495_v9 = vpack.c.bf16 %v493_v7, %v492_v6 }
 0x2ce   : > { %698 = vmatmul.msk.bf16.vlgmr.msra.gmra.mxu3 %vm388_vm14, %v495_v9 }
 0x33b   : > { %v544_v11 = vpop.f32.mrf.mxu1 }
 0x33c   : > { %v545_v12 = vadd.f32 %v544_v11, %v504_v8 }
 0x33e   : > { %v554_v15 = vmax.f32 %v545_v12, 0.0 }
 0x343   : > { %v546_v13 = vpop.f32.mrf.mxu1 }
 0x344   : > { %v547_v14 = vadd.f32 %v546_v13, %v504_v8 }
 0x346   : > { %v555_v16 = vmax.f32 %v547_v14, 0.0 }
 0x348   : > { %v558_v17 = vpack.c.bf16 %v555_v16, %v554_v15 }
 0x34a   : > { %707 = vmatmul.msk.bf16.vlgmr.msra.gmra.mxu2 %vm234_vm0, %v558_v17 }
 0x351   : > { %v549_v18 = vpop.f32.mrf.mxu3 }
 0x352   : > { %v550_v20 = vadd.f32 %v549_v18, %v504_v8 }
 0x354   : > { %v556_v23 = vmax.f32 %v550_v20, 0.0 }
 0x359   : > { %v551_v21 = vpop.f32.mrf.mxu3 }
 0x35a   : > { %v552_v22 = vadd.f32 %v551_v21, %v504_v8 }
 0x35c   : > { %v557_v24 = vmax.f32 %v552_v22, 0.0 }
 0x35e   : > { %v559_v25 = vpack.c.bf16 %v557_v24, %v556_v23 }
 0x360   : > { %708 = vmatmul.msk.bf16.gmra.mxu2 %vm234_vm0, %v559_v25 }
 0x3cd   : > { %v592_v27 = vpop.f32.mrf.mxu2 }
 0x3ce   : > { %v593_v28 = vadd.f32 %v592_v27, %v564_v26 }
 0x3d0   : > { %602 = vst [vmem:[%s226_s23] sm:$0xff] %v593_v28 }
 0x3d5   : > { %v594_v30 = vpop.f32.mrf.mxu2 }
 0x3d6   : > { %v595_v31 = vadd.f32 %v594_v30, %v564_v26 }
 0x3d8   : > { %603 = vst [vmem:[%s226_s23 + $0x8] sm:$0xff] %v595_v31 }
 0x3e3   : > { %v597_v32 = vpop.f32.mrf.mxu2 }
 0x3e4   : > { %v598_v33 = vadd.f32 %v597_v32, %v564_v26 }
 0x3e6   : > { %604 = vst [vmem:[%s226_s23 + $0x10] sm:$0xff] %v598_v33 }
 0x3eb   : > { %v599_v34 = vpop.f32.mrf.mxu2 }
 0x3ec   : > { %v600_v35 = vadd.f32 %v599_v34, %v564_v26 }
 0x3ee   : > { %605 = vst [vmem:[%s226_s23 + $0x18] sm:$0xff] %v600_v35 }
 0x3ef PF: > { %s15_s18 = sadd.s32 1, %s759_s18  }
 0x3f0   : > { %p12_p4 = scmp.ge.s32.totalorder %s15_s18, 4  }
 0x3f2   :  { %14 = sbr.rel (!%p12_p4) target bundleno = 1 (0x1), region = 70 }

</bundles_post_ra>
